<compile_context>
chip_gen: v5e
topology: v5e:2x2
jax: 0.10.0
libtpu: 0.0.40
codegen_flags: <defaults>
</compile_context>

<pallas_src>
import functools

import jax
import jax.numpy as jnp
from jax import lax
from jax.experimental import pallas as pl
from jax.experimental.pallas import tpu as pltpu


def _convlstm_cell_kernel(w_ref, xcol_ref, c_ref, hn_ref, cn_ref, *, Ch):
    """One lane-block of folded pixels per grid step.

    w_ref    : (4*Ch, Kp)       bf16  packed conv weights + bias column.
    xcol_ref : (Kp, block_n)    bf16  im2col patches (+ ones row for bias).
    c_ref    : (Ch, block_n)    f32   previous cell state.
    hn_ref   : (Ch, block_n)          next hidden state (out).
    cn_ref   : (Ch, block_n)          next cell state   (out).
    """
    # Single fused-K MXU matmul: conv + bias for all four gates at once.
    acc = jnp.dot(w_ref[...], xcol_ref[...],
                  preferred_element_type=jnp.float32)     # (4*Ch, block_n) f32

    # Gates: i|f|o rows through one tanh-based sigmoid pass, g rows via tanh.
    sig = 0.5 * jnp.tanh(0.5 * acc[:3 * Ch, :]) + 0.5
    it = sig[0 * Ch:1 * Ch, :]
    ft = sig[1 * Ch:2 * Ch, :]
    ot = sig[2 * Ch:3 * Ch, :]
    gt = jnp.tanh(acc[3 * Ch:, :])

    c_prev = c_ref[...].astype(jnp.float32)
    c_next = ft * c_prev + it * gt
    h_next = ot * jnp.tanh(c_next)

    # Fully lane-dense (block_n is a multiple of 128) unmasked stores.
    cn_ref[...] = c_next.astype(cn_ref.dtype)
    hn_ref[...] = h_next.astype(hn_ref.dtype)


@jax.jit
def convlstm_cell(x, h, c, weight, bias):
    """x:(B,Cin,H,W), h/c:(B,Ch,H,W), weight:(4*Ch,Cin+Ch,3,3), bias:(4*Ch,)."""
    B, Cin, H, W = x.shape
    Ch = h.shape[1]
    Ct = Cin + Ch
    G = 4 * Ch

    K = 9 * Ct + 1                      # 9 taps * channels + 1 bias row
    Kp = ((K + 15) // 16) * 16          # pad contraction to a bf16 sublane tile
    N = B * H * W                       # folded pixel axis (lanes)

    # Two parallel lane-blocks when N allows -> one per v7x TensorCore; on
    # single-TC v5e/v6e this is one extra tiny grid step.
    n_blocks = 2 if (N % 256 == 0) else 1
    block_n = N // n_blocks

    # --- wrapper-side im2col (tiny; fused XLA pad/slice/stack) -------------
    xh = jnp.concatenate([x, h], axis=1)                        # (B, Ct, H, W)
    xh_pad = jnp.pad(xh, ((0, 0), (0, 0), (1, 1), (1, 1)))      # (B, Ct, H+2, W+2)
    taps = [xh_pad[:, :, dy:dy + H, dx:dx + W]
            for dy in range(3) for dx in range(3)]              # 9 x (B, Ct, H, W)
    xcol = jnp.stack(taps, axis=0)                              # (9, B, Ct, H, W)
    xcol = jnp.transpose(xcol, (0, 2, 1, 3, 4)).reshape(9 * Ct, N)
    xcol = jnp.concatenate(
        [xcol,
         jnp.ones((1, N), xcol.dtype),                          # bias row
         jnp.zeros((Kp - K, N), xcol.dtype)], axis=0)           # K padding
    xcol = xcol.astype(jnp.bfloat16)                            # (Kp, N)

    # OIHW -> dense (4*Ch, 9*Ct) with k = (dy*3+dx)*Ct + c, plus bias column.
    w2 = jnp.transpose(weight, (0, 2, 3, 1)).reshape(G, 9 * Ct)
    w2 = jnp.concatenate(
        [w2, bias.reshape(G, 1).astype(w2.dtype),
         jnp.zeros((G, Kp - K), w2.dtype)], axis=1)
    w2 = w2.astype(jnp.bfloat16)                                # (G, Kp)

    # Cell state in the same channels-on-sublanes / pixels-on-lanes layout.
    c_flat = jnp.transpose(c, (1, 0, 2, 3)).reshape(Ch, N).astype(jnp.float32)

    kernel = functools.partial(_convlstm_cell_kernel, Ch=Ch)

    hn_flat, cn_flat = pl.pallas_call(
        kernel,
        out_shape=(jax.ShapeDtypeStruct((Ch, N), x.dtype),
                   jax.ShapeDtypeStruct((Ch, N), x.dtype)),
        grid_spec=pltpu.PrefetchScalarGridSpec(
            num_scalar_prefetch=0,
            grid=(n_blocks,),
            in_specs=[
                pl.BlockSpec((G, Kp), lambda n: (0, 0)),        # weights (resident)
                pl.BlockSpec((Kp, block_n), lambda n: (0, n)),  # im2col patches
                pl.BlockSpec((Ch, block_n), lambda n: (0, n)),  # prev cell state
            ],
            out_specs=[
                pl.BlockSpec((Ch, block_n), lambda n: (0, n)),
                pl.BlockSpec((Ch, block_n), lambda n: (0, n)),
            ],
        ),
        compiler_params=pltpu.CompilerParams(
            dimension_semantics=("parallel",)),
    )(w2, xcol, c_flat)

    # Back to NCHW (no junk lanes to drop; pure layout plumbing).
    h_next = jnp.transpose(hn_flat.reshape(Ch, B, H, W), (1, 0, 2, 3))
    c_next = jnp.transpose(cn_flat.reshape(Ch, B, H, W), (1, 0, 2, 3))
    return h_next, c_next


def convlstm_cell_ref(x, h, c, weight, bias):
    """Pure-JAX (f32) reference for correctness check."""
    xh = jnp.concatenate([x, h], axis=1)
    conv = lax.conv_general_dilated(
        xh, weight, window_strides=(1, 1), padding="SAME",
        dimension_numbers=("NCHW", "OIHW", "NCHW"))
    conv = conv + bias[None, :, None, None]
    Ch = h.shape[1]
    it, ft, ot, gt = jnp.split(conv, 4, axis=1)
    it, ft, ot = jax.nn.sigmoid(it), jax.nn.sigmoid(ft), jax.nn.sigmoid(ot)
    gt = jnp.tanh(gt)
    c_next = ft * c + it * gt
    h_next = ot * jnp.tanh(c_next)
    return h_next, c_next


if __name__ == "__main__":
    B, H, W = 2, 16, 16
    in_dim, channels, k = 4, 32, 3
    Ct = in_dim + channels

    key = jax.random.PRNGKey(0)
    kx, kh, kc, kw, kb = jax.random.split(key, 5)

    x = jax.random.normal(kx, (B, in_dim, H, W), dtype=jnp.float32)
    h = jax.random.normal(kh, (B, channels, H, W), dtype=jnp.float32)
    c = jax.random.normal(kc, (B, channels, H, W), dtype=jnp.float32)

    # Deterministic synthetic conv params in PyTorch OIHW layout.
    weight = 0.1 * jax.random.normal(kw, (4 * channels, Ct, k, k),
                                     dtype=jnp.float32)
    bias = 0.1 * jax.random.normal(kb, (4 * channels,), dtype=jnp.float32)

    h_next, c_next = convlstm_cell(x, h, c, weight, bias)
    jax.block_until_ready((h_next, c_next))

    h_ref, c_ref = convlstm_cell_ref(x, h, c, weight, bias)
    # bf16 MXU operands vs. f32 reference -> loosened tolerance.
    assert h_next.shape == h_ref.shape and c_next.shape == c_ref.shape
    assert jnp.allclose(h_next, h_ref, atol=5e-2, rtol=5e-2), \
        float(jnp.max(jnp.abs(h_next - h_ref)))
    assert jnp.allclose(c_next, c_ref, atol=5e-2, rtol=5e-2), \
        float(jnp.max(jnp.abs(c_next - c_ref)))

    print("KERNEL_OK")
</pallas_src>

<mosaic_0001>
module attributes {stable_mosaic.version = 11 : i64} {
  func.func @_convlstm_cell_kernel(%arg0: i32, %arg1: memref<128x336xbf16, #tpu.memory_space<vmem>>, %arg2: memref<336x256xbf16, #tpu.memory_space<vmem>>, %arg3: memref<32x256xf32, #tpu.memory_space<vmem>>, %arg4: memref<32x256xf32, #tpu.memory_space<vmem>>, %arg5: memref<32x256xf32, #tpu.memory_space<vmem>>) attributes {dimension_semantics = [#tpu.dimension_semantics<parallel>], iteration_bounds = array<i64: 2>, scalar_prefetch = 0 : i64, scratch_operands = 0 : i64, tpu.core_type = #tpu.core_type<tc>, window_params = [{pipeline_mode = #tpu.pipeline_mode<synchronous>, transform_indices = @transform_0, window_bounds = array<i64: 128, 336>}, {transform_indices = @transform_1, window_bounds = array<i64: 336, 256>}, {transform_indices = @transform_2, window_bounds = array<i64: 32, 256>}, {transform_indices = @transform_3, window_bounds = array<i64: 32, 256>}, {transform_indices = @transform_4, window_bounds = array<i64: 32, 256>}]} {
    %c0 = arith.constant 0 : index
    %c0_0 = arith.constant 0 : index
    %0 = vector.load %arg1[%c0, %c0_0] : memref<128x336xbf16, #tpu.memory_space<vmem>>, vector<128x336xbf16>
    %c0_1 = arith.constant 0 : index
    %c0_2 = arith.constant 0 : index
    %1 = vector.load %arg2[%c0_1, %c0_2] : memref<336x256xbf16, #tpu.memory_space<vmem>>, vector<336x256xbf16>
    %cst = arith.constant dense<0.000000e+00> : vector<128x256xf32>
    %2 = tpu.matmul %0, %1, %cst {dimension_numbers = #tpu.dot_dimension_numbers<[1], [0], [0], [1], [0, 0, 1, 1], [], []>} : vector<128x336xbf16>, vector<336x256xbf16>, vector<128x256xf32> -> vector<128x256xf32>
    %3 = vector.extract_strided_slice %2 {offsets = [0, 0], sizes = [96, 256], strides = [1, 1]} : vector<128x256xf32> to vector<96x256xf32>
    %cst_3 = arith.constant 5.000000e-01 : f32
    %4 = vector.broadcast %cst_3 : f32 to vector<96x256xf32>
    %5 = arith.mulf %4, %3 : vector<96x256xf32>
    %6 = math.tanh %5 : vector<96x256xf32>
    %cst_4 = arith.constant 5.000000e-01 : f32
    %7 = vector.broadcast %cst_4 : f32 to vector<96x256xf32>
    %8 = arith.mulf %7, %6 : vector<96x256xf32>
    %cst_5 = arith.constant 5.000000e-01 : f32
    %9 = vector.broadcast %cst_5 : f32 to vector<96x256xf32>
    %10 = arith.addf %8, %9 : vector<96x256xf32>
    %11 = vector.extract_strided_slice %10 {offsets = [0, 0], sizes = [32, 256], strides = [1, 1]} : vector<96x256xf32> to vector<32x256xf32>
    %12 = vector.extract_strided_slice %10 {offsets = [32, 0], sizes = [32, 256], strides = [1, 1]} : vector<96x256xf32> to vector<32x256xf32>
    %13 = vector.extract_strided_slice %10 {offsets = [64, 0], sizes = [32, 256], strides = [1, 1]} : vector<96x256xf32> to vector<32x256xf32>
    %14 = vector.extract_strided_slice %2 {offsets = [96, 0], sizes = [32, 256], strides = [1, 1]} : vector<128x256xf32> to vector<32x256xf32>
    %15 = math.tanh %14 : vector<32x256xf32>
    %c0_6 = arith.constant 0 : index
    %c0_7 = arith.constant 0 : index
    %16 = vector.load %arg3[%c0_6, %c0_7] : memref<32x256xf32, #tpu.memory_space<vmem>>, vector<32x256xf32>
    %17 = arith.mulf %12, %16 : vector<32x256xf32>
    %18 = arith.mulf %11, %15 : vector<32x256xf32>
    %19 = arith.addf %17, %18 : vector<32x256xf32>
    %20 = math.tanh %19 : vector<32x256xf32>
    %21 = arith.mulf %13, %20 : vector<32x256xf32>
    %c0_8 = arith.constant 0 : index
    %c0_9 = arith.constant 0 : index
    %22 = vector.load %arg5[%c0_8, %c0_9] : memref<32x256xf32, #tpu.memory_space<vmem>>, vector<32x256xf32>
    tpu.vector_store %arg5[%c0_8, %c0_9], %19 {strides = array<i32>} : memref<32x256xf32, #tpu.memory_space<vmem>>, vector<32x256xf32>,
    %c0_10 = arith.constant 0 : index
    %c0_11 = arith.constant 0 : index
    %23 = vector.load %arg4[%c0_10, %c0_11] : memref<32x256xf32, #tpu.memory_space<vmem>>, vector<32x256xf32>
    tpu.vector_store %arg4[%c0_10, %c0_11], %21 {strides = array<i32>} : memref<32x256xf32, #tpu.memory_space<vmem>>, vector<32x256xf32>,
    return
  }
  func.func @transform_0(%arg0: i32) -> (i32, i32) {
    %c0_i32 = arith.constant 0 : i32
    %c0_i32_0 = arith.constant 0 : i32
    %c0_i32_1 = arith.constant 0 : i32
    return %c0_i32, %c0_i32_0 : i32, i32
  }
  func.func @transform_1(%arg0: i32) -> (i32, i32) {
    %c0_i32 = arith.constant 0 : i32
    %c0_i32_0 = arith.constant 0 : i32
    return %c0_i32, %arg0 : i32, i32
  }
  func.func @transform_2(%arg0: i32) -> (i32, i32) {
    %c0_i32 = arith.constant 0 : i32
    %c0_i32_0 = arith.constant 0 : i32
    return %c0_i32, %arg0 : i32, i32
  }
  func.func @transform_3(%arg0: i32) -> (i32, i32) {
    %c0_i32 = arith.constant 0 : i32
    %c0_i32_0 = arith.constant 0 : i32
    return %c0_i32, %arg0 : i32, i32
  }
  func.func @transform_4(%arg0: i32) -> (i32, i32) {
    %c0_i32 = arith.constant 0 : i32
    %c0_i32_0 = arith.constant 0 : i32
    return %c0_i32, %arg0 : i32, i32
  }
}

</mosaic_0001>

<bundles_post_ra>
// kernel: convlstm_cell.1
= control target key start
LH: loop header
LB: loop body
LE: loop exit
PB: predicated region body
PF: predicated region fallthrough
CT: control target
= control target key end

     0   :  { %s2072_s15 = smov 0   ;;  %s2074_s16 = smov 0   ;;  %s2726_s0 = inlined_call_operand.vmem [shape: bf16[128,336], index: 0, kind: input, shape index: {}]   ;;  %s2727_s1 = inlined_call_operand.vmem [shape: bf16[336,512], index: 1, kind: input, shape index: {}]   ;;  %s2728_s2 = inlined_call_operand.vmem [shape: f32[32,512], index: 2, kind: input, shape index: {}]   ;;  %s2729_s3 = inlined_call_operand.vmem [shape: f32[32,512], index: 3, kind: output, shape index: {0}]   ;;  %s2730_s4 = inlined_call_operand.vmem [shape: f32[32,512], index: 4, kind: output, shape index: {1}]  }
   0x1   :  { %s2076_s17 = smov 0  }
   0x2 LB: > { %s2088_s18 = sadd.s32 4294967295, %s2045_s17   ;;  %s2091_s19 = sadd.s32 1, %s2045_s17   ;;  %s2045_s17 = sphi %s2076_s17, %s2735_s17   ;;  %s2041_s16 = sphi %s2074_s16, %s2734_s16   ;;  %s2037_s15 = sphi %s2072_s15, %s2733_s15  }
   0x3   : > { %s40_s20 = ssub.s32 %s2045_s17, %s2091_s19  ;;  %s43_s21 = sadd.s32 1, %s2041_s16 }
   0x4   : > { %p41_p0 = scmp.eq.s32.totalorder %s40_s20, 0  ;;  %p50_p1 = scmp.ne.s32.totalorder %s2041_s16, %s2037_s15 }
   0x5   : > { %p51_p2 = scmp.eq.s32.totalorder %s2045_s17, 0  ;;  %p106_p3 = scmp.eq.s32.totalorder %s2088_s18, 1 }
   0x6   : > { %s2101_s22 = scalar_select %p41_p0, %s2041_s16, %s43_s21  }
   0x7   : > { %p2103_p4 = por %p51_p2, %p50_p1  ;;  %p2107_p5 = por %p106_p3, %p50_p1 }
   0x8   : > { %p1536_p6 = scmp.ge.s32.totalorder %s2045_s17, 2 }
   0xa   : > { %157 = sbr.rel (%p1536_p6) target bundleno = 73 (0x49), region = 20 }
   0xf   : > { %160 = sbr.rel (!%p2103_p4) target bundleno = 61 (0x3d), region = 24  ;;  %s162_s25 = sand.u32 (%p2103_p4), 1, %s2041_s16  }
  0x10   : > { %s1834_s26 = sshll.u32 (%p2103_p4), %s2045_s17, 3  ;;  %s1917_s27 = smul.u32 (%p2103_p4), 336, %s162_s25 }
  0x11   : > { %s2119_s30 = scalar_lea.vmem (%p2103_p4), %s2727_s1, %s1834_s26 }
  0x12   : > { %v278_v0 = vld [vmem:[%s2119_s30] sm:$0xff] (%p2103_p4)  ;;  %v280_v1 = vld [vmem:[%s2119_s30 + $0x10] sm:$0xff] (%p2103_p4)  ;;  %s2124_s5 = scalar_lea.vmem (%p2103_p4), [#allocation2], %s1917_s27 }
  0x13   : > { %v282_v2 = vld [vmem:[%s2119_s30 + $0x20] sm:$0xff] (%p2103_p4)  ;;  %279 = vst [vmem:[%s2124_s5] sm:$0xff] (%p2103_p4), %v278_v0  ;;  %v284_v3 = vld [vmem:[%s2119_s30 + $0x30] sm:$0xff] (%p2103_p4) }
  0x14   : > { %281 = vst [vmem:[%s2124_s5 + $0x8] sm:$0xff] %v280_v1  ;;  %v286_v4 = vld [vmem:[%s2119_s30 + $0x40] sm:$0xff]  ;;  %v288_v5 = vld [vmem:[%s2119_s30 + $0x50] sm:$0xff] }
  0x15   : > { %283 = vst [vmem:[%s2124_s5 + $0x10] sm:$0xff] %v282_v2  ;;  %v290_v6 = vld [vmem:[%s2119_s30 + $0x60] sm:$0xff]  ;;  %v292_v7 = vld [vmem:[%s2119_s30 + $0x70] sm:$0xff] }
  0x16   : > { %285 = vst [vmem:[%s2124_s5 + $0x18] sm:$0xff] %v284_v3  ;;  %v294_v8 = vld [vmem:[%s2119_s30 + $0x80] sm:$0xff]  ;;  %v296_v9 = vld [vmem:[%s2119_s30 + $0x90] sm:$0xff] }
  0x17   : > { %287 = vst [vmem:[%s2124_s5 + $0x20] sm:$0xff] %v286_v4  ;;  %v298_v10 = vld [vmem:[%s2119_s30 + $0xa0] sm:$0xff]  ;;  %v300_v11 = vld [vmem:[%s2119_s30 + $0xb0] sm:$0xff] }
  0x18   : > { %289 = vst [vmem:[%s2124_s5 + $0x28] sm:$0xff] %v288_v5  ;;  %v302_v12 = vld [vmem:[%s2119_s30 + $0xc0] sm:$0xff]  ;;  %v304_v13 = vld [vmem:[%s2119_s30 + $0xd0] sm:$0xff] }
  0x19   : > { %291 = vst [vmem:[%s2124_s5 + $0x30] sm:$0xff] %v290_v6  ;;  %v306_v14 = vld [vmem:[%s2119_s30 + $0xe0] sm:$0xff]  ;;  %v308_v15 = vld [vmem:[%s2119_s30 + $0xf0] sm:$0xff] }
  0x1a   : > { %293 = vst [vmem:[%s2124_s5 + $0x38] sm:$0xff] %v292_v7  ;;  %v310_v16 = vld [vmem:[%s2119_s30 + $0x100] sm:$0xff]  ;;  %v312_v17 = vld [vmem:[%s2119_s30 + $0x110] sm:$0xff] }
  0x1b   : > { %295 = vst [vmem:[%s2124_s5 + $0x40] sm:$0xff] %v294_v8  ;;  %v314_v18 = vld [vmem:[%s2119_s30 + $0x120] sm:$0xff]  ;;  %v316_v19 = vld [vmem:[%s2119_s30 + $0x130] sm:$0xff] }
  0x1c   : > { %297 = vst [vmem:[%s2124_s5 + $0x48] sm:$0xff] %v296_v9  ;;  %v318_v20 = vld [vmem:[%s2119_s30 + $0x140] sm:$0xff]  ;;  %v320_v21 = vld [vmem:[%s2119_s30 + $0x150] sm:$0xff] }
  0x1d   : > { %299 = vst [vmem:[%s2124_s5 + $0x50] sm:$0xff] %v298_v10  ;;  %v322_v22 = vld [vmem:[%s2119_s30 + $0x160] sm:$0xff]  ;;  %v324_v23 = vld [vmem:[%s2119_s30 + $0x170] sm:$0xff] }
  0x1e   : > { %301 = vst [vmem:[%s2124_s5 + $0x58] sm:$0xff] %v300_v11  ;;  %v326_v24 = vld [vmem:[%s2119_s30 + $0x180] sm:$0xff]  ;;  %v328_v25 = vld [vmem:[%s2119_s30 + $0x190] sm:$0xff] }
  0x1f   : > { %303 = vst [vmem:[%s2124_s5 + $0x60] sm:$0xff] %v302_v12  ;;  %v330_v26 = vld [vmem:[%s2119_s30 + $0x1a0] sm:$0xff]  ;;  %v332_v27 = vld [vmem:[%s2119_s30 + $0x1b0] sm:$0xff] }
  0x20   : > { %305 = vst [vmem:[%s2124_s5 + $0x68] sm:$0xff] %v304_v13  ;;  %v334_v28 = vld [vmem:[%s2119_s30 + $0x1c0] sm:$0xff]  ;;  %v336_v29 = vld [vmem:[%s2119_s30 + $0x1d0] sm:$0xff] }
  0x21   : > { %307 = vst [vmem:[%s2124_s5 + $0x70] sm:$0xff] %v306_v14  ;;  %v338_v30 = vld [vmem:[%s2119_s30 + $0x1e0] sm:$0xff]  ;;  %v340_v31 = vld [vmem:[%s2119_s30 + $0x1f0] sm:$0xff] }
  0x22   : > { %309 = vst [vmem:[%s2124_s5 + $0x78] sm:$0xff] %v308_v15  ;;  %v342_v32 = vld [vmem:[%s2119_s30 + $0x200] sm:$0xff]  ;;  %v344_v33 = vld [vmem:[%s2119_s30 + $0x210] sm:$0xff] }
  0x23   : > { %311 = vst [vmem:[%s2124_s5 + $0x80] sm:$0xff] %v310_v16  ;;  %v346_v34 = vld [vmem:[%s2119_s30 + $0x220] sm:$0xff]  ;;  %v348_v35 = vld [vmem:[%s2119_s30 + $0x230] sm:$0xff] }
  0x24   : > { %313 = vst [vmem:[%s2124_s5 + $0x88] sm:$0xff] %v312_v17  ;;  %v350_v36 = vld [vmem:[%s2119_s30 + $0x240] sm:$0xff]  ;;  %v352_v37 = vld [vmem:[%s2119_s30 + $0x250] sm:$0xff] }
  0x25   : > { %315 = vst [vmem:[%s2124_s5 + $0x90] sm:$0xff] %v314_v18  ;;  %v354_v38 = vld [vmem:[%s2119_s30 + $0x260] sm:$0xff]  ;;  %v356_v39 = vld [vmem:[%s2119_s30 + $0x270] sm:$0xff] }
  0x26   : > { %317 = vst [vmem:[%s2124_s5 + $0x98] sm:$0xff] %v316_v19  ;;  %v358_v40 = vld [vmem:[%s2119_s30 + $0x280] sm:$0xff]  ;;  %v360_v41 = vld [vmem:[%s2119_s30 + $0x290] sm:$0xff] }
  0x27   : > { %319 = vst [vmem:[%s2124_s5 + $0xa0] sm:$0xff] %v318_v20 }
  0x28   : > { %321 = vst [vmem:[%s2124_s5 + $0xa8] sm:$0xff] %v320_v21 }
  0x29   : > { %323 = vst [vmem:[%s2124_s5 + $0xb0] sm:$0xff] %v322_v22 }
  0x2a   : > { %325 = vst [vmem:[%s2124_s5 + $0xb8] sm:$0xff] %v324_v23 }
  0x2b   : > { %327 = vst [vmem:[%s2124_s5 + $0xc0] sm:$0xff] %v326_v24 }
  0x2c   : > { %329 = vst [vmem:[%s2124_s5 + $0xc8] sm:$0xff] %v328_v25 }
  0x2d   : > { %331 = vst [vmem:[%s2124_s5 + $0xd0] sm:$0xff] %v330_v26 }
  0x2e   : > { %333 = vst [vmem:[%s2124_s5 + $0xd8] sm:$0xff] %v332_v27 }
  0x2f   : > { %335 = vst [vmem:[%s2124_s5 + $0xe0] sm:$0xff] %v334_v28 }
  0x30   : > { %337 = vst [vmem:[%s2124_s5 + $0xe8] sm:$0xff] %v336_v29 }
  0x31   : > { %339 = vst [vmem:[%s2124_s5 + $0xf0] sm:$0xff] %v338_v30 }
  0x32   : > { %341 = vst [vmem:[%s2124_s5 + $0xf8] sm:$0xff] %v340_v31 }
  0x33   : > { %343 = vst [vmem:[%s2124_s5 + $0x100] sm:$0xff] %v342_v32 }
  0x34   : > { %345 = vst [vmem:[%s2124_s5 + $0x108] sm:$0xff] %v344_v33 }
  0x35   : > { %347 = vst [vmem:[%s2124_s5 + $0x110] sm:$0xff] %v346_v34 }
  0x36   : > { %349 = vst [vmem:[%s2124_s5 + $0x118] sm:$0xff] %v348_v35 }
  0x37   : > { %351 = vst [vmem:[%s2124_s5 + $0x120] sm:$0xff] %v350_v36 }
  0x38   : > { %353 = vst [vmem:[%s2124_s5 + $0x128] sm:$0xff] %v352_v37 }
  0x39   : > { %355 = vst [vmem:[%s2124_s5 + $0x130] sm:$0xff] %v354_v38 }
  0x3a   : > { %357 = vst [vmem:[%s2124_s5 + $0x138] sm:$0xff] %v356_v39 }
  0x3b   : > { %359 = vst [vmem:[%s2124_s5 + $0x140] sm:$0xff] %v358_v40 }
  0x3c   : > { %361 = vst [vmem:[%s2124_s5 + $0x148] sm:$0xff] %v360_v41 }
  0x3d PF: > { %367 = sbr.rel (!%p2103_p4) target bundleno = 73 (0x49), region = 62  ;;  %s369_s6 = sand.u32 (%p2103_p4), 1, %s2041_s16  }
  0x3e   : > { %s1835_s7 = sshll.u32 (%p2103_p4), %s2045_s17, 4  ;;  %s1539_s8 = sshll.u32 (%p2103_p4), %s369_s6, 6 }
  0x3f   : > { %s374_s11 = scalar_lea.vmem (%p2103_p4), %s2728_s2, %s1835_s7  ;;  %s371_s12 = scalar_lea.vmem (%p2103_p4), [#allocation3], %s1539_s8 }
  0x40   : > { %v387_v42 = vld [vmem:[%s374_s11] sm:$0xff] (%p2103_p4)  ;;  %v389_v43 = vld [vmem:[%s374_s11 + $0x8] sm:$0xff] (%p2103_p4) }
  0x41   : > { %v391_v44 = vld [vmem:[%s374_s11 + $0x20] sm:$0xff] (%p2103_p4)  ;;  %388 = vst [vmem:[%s371_s12] sm:$0xff] (%p2103_p4), %v387_v42  ;;  %v393_v45 = vld [vmem:[%s374_s11 + $0x28] sm:$0xff] (%p2103_p4) }
  0x42   : > { %390 = vst [vmem:[%s371_s12 + $0x8] sm:$0xff] %v389_v43  ;;  %v395_v46 = vld [vmem:[%s374_s11 + $0x40] sm:$0xff]  ;;  %v397_v47 = vld [vmem:[%s374_s11 + $0x48] sm:$0xff] }
  0x43   : > { %392 = vst [vmem:[%s371_s12 + $0x10] sm:$0xff] %v391_v44  ;;  %v399_v48 = vld [vmem:[%s374_s11 + $0x60] sm:$0xff]  ;;  %v401_v49 = vld [vmem:[%s374_s11 + $0x68] sm:$0xff] }
  0x44   : > { %394 = vst [vmem:[%s371_s12 + $0x18] sm:$0xff] %v393_v45 }
  0x45   : > { %396 = vst [vmem:[%s371_s12 + $0x20] sm:$0xff] %v395_v46 }
  0x46   : > { %398 = vst [vmem:[%s371_s12 + $0x28] sm:$0xff] %v397_v47 }
  0x47   : > { %400 = vst [vmem:[%s371_s12 + $0x30] sm:$0xff] %v399_v48 }
  0x48   : > { %402 = vst [vmem:[%s371_s12 + $0x38] sm:$0xff] %v401_v49 }
  0x49 PF: > { %p1542_p7 = scmp.ge.s32.totalorder %s2045_s17, 1  ;;  %p407_p8 = scmp.lt.s32.totalorder %s2045_s17, 3 }
  0x4b   : > { %p408_p9 = pnand %p1542_p7, %p407_p8 }
  0x4c   : > { %s414_s13 = sand.u32 (!%p408_p9), 1, %s2037_s15  }
  0x4d   : > { %411 = sbr.rel (%p408_p9) target bundleno = 481 (0x1e1), region = 85  ;;  %s2603_s25 = sshll.u32 (!%p408_p9), %s414_s13, 6 }
  0x4e   : > { %s1918_s14 = smul.u32 (!%p408_p9), 336, %s414_s13  ;;  %s2615_s15 = scalar_lea.vmem (!%p408_p9), [#allocation3], %s2603_s25 }
  0x4f   : > { %s2638_s13 = scalar_lea.vmem (!%p408_p9), [#allocation5], %s2603_s25  ;;  %s2658_s26 = scalar_lea.vmem (!%p408_p9), [#allocation4], %s2603_s25 }
  0x50   : > { %s2219_s20 = scalar_lea.vmem (!%p408_p9), [#allocation2], %s1918_s14 }
  0x52   : > { %v1700_v50 = vld [vmem:[%s2219_s20 + $0x70] sm:$0xf]  ;;  %v1875_v51 = vld [vmem:[%s2219_s20 + $0x74] sm:$0xf0]  ;;  %v1804_v52 = vld [vmem:[%s2219_s20 + $0x140] sm:$0xf] }
  0x53   : > { %v1701_v53 = vor.u32 %v1875_v51, %v1700_v50  ;;  %v1901_v54 = vld [vmem:[%s2219_s20 + $0x144] sm:$0xf0]  ;;  %v1692_v55 = vld [vmem:[%s2219_s20 + $0x60] sm:$0xf]  ;;  %v1796_v58 = vld [vmem:[%s2219_s20 + $0x130] sm:$0xf] }
  0x54   : > { %v1873_v56 = vld [vmem:[%s2219_s20 + $0x64] sm:$0xf0]  ;;  %v1805_v57 = vor.u32 %v1901_v54, %v1804_v52  ;;  %v1899_v59 = vld [vmem:[%s2219_s20 + $0x134] sm:$0xf0]  ;;  %v1684_v62 = vld [vmem:[%s2219_s20 + $0x50] sm:$0xf] }
  0x55   : > { %1904 = vmatpush.bf16.msra.mxu1 %v1701_v53  ;;  %887 = vmatpush.bf16.msra.mxu0 %v1701_v53  ;;  %v1693_v60 = vor.u32 %v1873_v56, %v1692_v55  ;;  %v1797_v61 = vor.u32 %v1899_v59, %v1796_v58  ;;  %v1871_v63 = vld [vmem:[%s2219_s20 + $0x54] sm:$0xf0]  ;;  %v1788_v0 = vld [vmem:[%s2219_s20 + $0x120] sm:$0xf]  ;;  %v1897_v1 = vld [vmem:[%s2219_s20 + $0x124] sm:$0xf0] }
  0x56   : > { %988 = vmatpush.bf16.msra.mxu2 %v1805_v57  ;;  %1912 = vmatpush.bf16.msra.mxu3 %v1805_v57  ;;  %v1685_v2 = vor.u32 %v1871_v63, %v1684_v62  ;;  %v1789_v3 = vor.u32 %v1897_v1, %v1788_v0  ;;  %v1676_v4 = vld [vmem:[%s2219_s20 + $0x40] sm:$0xf]  ;;  %v1869_v5 = vld [vmem:[%s2219_s20 + $0x44] sm:$0xf0]  ;;  %v1780_v6 = vld [vmem:[%s2219_s20 + $0x110] sm:$0xf] }
  0x57   : > { %v1895_v7 = vld [vmem:[%s2219_s20 + $0x114] sm:$0xf0]  ;;  %v1677_v8 = vor.u32 %v1869_v5, %v1676_v4  ;;  %v1668_v10 = vld [vmem:[%s2219_s20 + $0x30] sm:$0xf]  ;;  %v1772_v12 = vld [vmem:[%s2219_s20 + $0x100] sm:$0xf] }
  0x58   : > { %v1781_v9 = vor.u32 %v1895_v7, %v1780_v6  ;;  %v1867_v11 = vld [vmem:[%s2219_s20 + $0x34] sm:$0xf0]  ;;  %v1893_v13 = vld [vmem:[%s2219_s20 + $0x104] sm:$0xf0]  ;;  %v1890_v14 = vld [vmem:[%s2219_s20 + $0xf4] sm:$0xf] }
  0x59   : > { %1905 = vmatpush.bf16.msra.mxu1 %v1693_v60  ;;  %888 = vmatpush.bf16.msra.mxu0 %v1693_v60  ;;  %v1766_v15 = vld [vmem:[%s2219_s20 + $0xf8] sm:$0xf0]  ;;  %v1669_v16 = vor.u32 %v1867_v11, %v1668_v10  ;;  %v1556_v17 = vld [vmem:[%s2726_s0 + $0x8] sm:$0xf]  ;;  %v1773_v18 = vor.u32 %v1893_v13, %v1772_v12  ;;  %v1838_v19 = vld [vmem:[%s2726_s0 + $0x10] sm:$0xf0] }
  0x5a   : > { %989 = vmatpush.bf16.msra.mxu2 %v1797_v61  ;;  %1913 = vmatpush.bf16.msra.mxu3 %v1797_v61  ;;  %v1660_v20 = vld [vmem:[%s2219_s20 + $0x20] sm:$0xf]  ;;  %v1865_v21 = vld [vmem:[%s2219_s20 + $0x24] sm:$0xf0]  ;;  %v1769_v22 = vor.u32 %v1890_v14, %v1766_v15  ;;  %v1853_v24 = vld [vmem:[%s2726_s0 + $0x88] sm:$0xf0]  ;;  %v2259_v27 = vor.u32 %v1838_v19, %v1556_v17 }
  0x5b   : > { %v1616_v23 = vld [vmem:[%s2726_s0 + $0x80] sm:$0xf]  ;;  %v1888_v25 = vld [vmem:[%s2219_s20 + $0xe4] sm:$0xf]  ;;  %v1758_v26 = vld [vmem:[%s2219_s20 + $0xe8] sm:$0xf0]  ;;  %v1661_v28 = vor.u32 %v1865_v21, %v1660_v20 }
  0x5c   : > { %vm862_vm0 = vcmask 654336   ;;  %v1652_v29 = vld [vmem:[%s2219_s20 + $0x10] sm:$0xf]  ;;  %v1863_v30 = vld [vmem:[%s2219_s20 + $0x14] sm:$0xf0]  ;;  %v2263_v31 = vor.u32 %v1853_v24, %v1616_v23  ;;  %v1761_v32 = vor.u32 %v1888_v25, %v1758_v26  ;;  %s1902_s27 = sshll.u32 (%p2107_p5), %s2088_s18, 4 }
  0x5d   : > { %1906 = vmatpush.bf16.msra.mxu1 %v1685_v2  ;;  %889 = vmatpush.bf16.msra.mxu0 %v1685_v2  ;;  %v1886_v33 = vld [vmem:[%s2219_s20 + $0xd4] sm:$0xf]  ;;  %v1750_v34 = vld [vmem:[%s2219_s20 + $0xd8] sm:$0xf0]  ;;  %v1653_v35 = vor.u32 %v1863_v30, %v1652_v29  ;;  %v1644_v36 = vld [vmem:[%s2219_s20] sm:$0xf]  ;;  %s1362_s30 = scalar_lea.vmem (%p2107_p5), %s2729_s3, %s1902_s27 }
  0x5e   : > { %990 = vmatpush.bf16.msra.mxu2 %v1789_v3  ;;  %1914 = vmatpush.bf16.msra.mxu3 %v1789_v3  ;;  %v1874_v37 = vld [vmem:[%s2219_s20 + $0x74] sm:$0xf]  ;;  %v1702_v38 = vld [vmem:[%s2219_s20 + $0x78] sm:$0xf0]  ;;  %v1861_v39 = vld [vmem:[%s2219_s20 + $0x4] sm:$0xf0]  ;;  %v1753_v43 = vor.u32 %v1886_v33, %v1750_v34 }
  0x5f   : > { %v1764_v40 = vld [vmem:[%s2219_s20 + $0xf0] sm:$0xf]  ;;  %v1891_v41 = vld [vmem:[%s2219_s20 + $0xf4] sm:$0xf0]  ;;  %v1705_v42 = vor.u32 %v1874_v37, %v1702_v38  ;;  %v1900_v44 = vld [vmem:[%s2219_s20 + $0x144] sm:$0xf]  ;;  %v1645_v51 = vor.u32 %v1861_v39, %v1644_v36 }
  0x60   : > { %v1872_v45 = vld [vmem:[%s2219_s20 + $0x64] sm:$0xf]  ;;  %v1694_v46 = vld [vmem:[%s2219_s20 + $0x68] sm:$0xf0]  ;;  %v1596_v52 = vld [vmem:[%s2726_s0 + $0x60] sm:$0xf]  ;;  %v1765_v56 = vor.u32 %v1891_v41, %v1764_v40 }
  0x61   : > { %1907 = vmatpush.bf16.msra.mxu1 %v1677_v8  ;;  %890 = vmatpush.bf16.msra.mxu0 %v1677_v8  ;;  %v1806_v47 = vld [vmem:[%s2219_s20 + $0x148] sm:$0xf0]  ;;  %v1884_v48 = vld [vmem:[%s2219_s20 + $0xc4] sm:$0xf]  ;;  %v1697_v50 = vor.u32 %v1872_v45, %v1694_v46  ;;  %v1548_v54 = vld [vmem:[%s2726_s0] sm:$0xf] }
  0x62   : > { %991 = vmatpush.bf16.msra.mxu2 %v1781_v9  ;;  %1915 = vmatpush.bf16.msra.mxu3 %v1781_v9  ;;  %v1742_v49 = vld [vmem:[%s2219_s20 + $0xc8] sm:$0xf0]  ;;  %v1809_v57 = vor.u32 %v1900_v44, %v1806_v47  ;;  %v1756_v58 = vld [vmem:[%s2219_s20 + $0xe0] sm:$0xf]  ;;  %v1889_v59 = vld [vmem:[%s2219_s20 + $0xe4] sm:$0xf0] }
  0x63   : > { %v1849_v53 = vld [vmem:[%s2726_s0 + $0x68] sm:$0xf0]  ;;  %v1745_v60 = vor.u32 %v1884_v48, %v1742_v49  ;;  %v1898_v61 = vld [vmem:[%s2219_s20 + $0x134] sm:$0xf]  ;;  %v1568_v3 = vld [vmem:[%s2726_s0 + $0x20] sm:$0xf]  ;;  %v1757_v5 = vor.u32 %v1889_v59, %v1756_v58 }
  0x64   : > { %v1837_v55 = vld [vmem:[%s2726_s0 + $0x8] sm:$0xf0]  ;;  %v2298_v62 = vor.u32 %v1849_v53, %v1596_v52  ;;  %v1882_v0 = vld [vmem:[%s2219_s20 + $0xb4] sm:$0xf]  ;;  %v1748_v6 = vld [vmem:[%s2219_s20 + $0xd0] sm:$0xf] }
  0x65   : > { %1908 = vmatpush.bf16.msra.mxu1 %v1669_v16  ;;  %891 = vmatpush.bf16.msra.mxu0 %v1669_v16  ;;  %v1798_v63 = vld [vmem:[%s2219_s20 + $0x138] sm:$0xf0]  ;;  %v2303_v2 = vor.u32 %v1837_v55, %v1548_v54  ;;  %v1887_v8 = vld [vmem:[%s2219_s20 + $0xd4] sm:$0xf0]  ;;  %v1856_v10 = vld [vmem:[%s2726_s0 + $0xa0] sm:$0xf0] }
  0x66   : > { %992 = vmatpush.bf16.msra.mxu2 %v1773_v18  ;;  %1916 = vmatpush.bf16.msra.mxu3 %v1773_v18  ;;  %v1734_v1 = vld [vmem:[%s2219_s20 + $0xb8] sm:$0xf0]  ;;  %v1801_v7 = vor.u32 %v1898_v61, %v1798_v63  ;;  %v1628_v9 = vld [vmem:[%s2726_s0 + $0x98] sm:$0xf]  ;;  %v1870_v12 = vld [vmem:[%s2219_s20 + $0x54] sm:$0xf]  ;;  %v1749_v16 = vor.u32 %v1887_v8, %v1748_v6 }
  0x67   : > { %v1841_v4 = vld [vmem:[%s2726_s0 + $0x28] sm:$0xf0]  ;;  %v1737_v11 = vor.u32 %v1882_v0, %v1734_v1  ;;  %v2325_v17 = vor.u32 %v1856_v10, %v1628_v9  ;;  %v1740_v18 = vld [vmem:[%s2219_s20 + $0xc0] sm:$0xf]  ;;  %v1885_v19 = vld [vmem:[%s2219_s20 + $0xc4] sm:$0xf0] }
  0x68   : > { %v1686_v13 = vld [vmem:[%s2219_s20 + $0x58] sm:$0xf0]  ;;  %v2323_v14 = vor.u32 %v1841_v4, %v1568_v3  ;;  %v1868_v20 = vld [vmem:[%s2219_s20 + $0x44] sm:$0xf]  ;;  %v1678_v21 = vld [vmem:[%s2219_s20 + $0x48] sm:$0xf0]  ;;  %v1741_v23 = vor.u32 %v1885_v19, %v1740_v18 }
  0x69   : > { %1810 = vmatmul.msk.bf16.vlgmr.msra.gmra.mxu2 %vm862_vm0, %v2259_v27  ;;  %1909 = vmatpush.bf16.msra.mxu1 %v1661_v28  ;;  %v1689_v15 = vor.u32 %v1870_v12, %v1686_v13  ;;  %v1681_v24 = vor.u32 %v1868_v20, %v1678_v21  ;;  %v1726_v25 = vld [vmem:[%s2219_s20 + $0xa8] sm:$0xf0]  ;;  %v1896_v26 = vld [vmem:[%s2219_s20 + $0x124] sm:$0xf]  ;;  %v1883_v33 = vld [vmem:[%s2219_s20 + $0xb4] sm:$0xf0] }
  0x6a   : > { %1083 = vmatpush.bf16.msrb.mxu2 %v1769_v22  ;;  %892 = vmatpush.bf16.msra.mxu0 %v1661_v28  ;;  %v1880_v22 = vld [vmem:[%s2219_s20 + $0xa4] sm:$0xf]  ;;  %v1790_v28 = vld [vmem:[%s2219_s20 + $0x128] sm:$0xf0]  ;;  %v1866_v34 = vld [vmem:[%s2219_s20 + $0x34] sm:$0xf] }
  0x6b   : > { %1815 = vmatmul.msk.bf16.vlgmr.msra.gmra.mxu3 %vm862_vm0, %v2263_v31  ;;  %v1729_v29 = vor.u32 %v1880_v22, %v1726_v25  ;;  %v1793_v30 = vor.u32 %v1896_v26, %v1790_v28  ;;  %v1608_v36 = vld [vmem:[%s2726_s0 + $0x78] sm:$0xf]  ;;  %v1852_v37 = vld [vmem:[%s2726_s0 + $0x80] sm:$0xf0]  ;;  %v1640_v46 = vld [vmem:[%s2726_s0 + $0xb0] sm:$0xf] }
  0x6c   : > { %1034 = vmatpush.bf16.msrb.mxu3 %v1705_v42  ;;  %v1560_v39 = vld [vmem:[%s2726_s0 + $0x18] sm:$0xf]  ;;  %v1840_v40 = vld [vmem:[%s2726_s0 + $0x20] sm:$0xf0]  ;;  %v2355_v42 = vor.u32 %v1852_v37, %v1608_v36  ;;  %v1859_v47 = vld [vmem:[%s2726_s0 + $0xb8] sm:$0xf0] }
  0x6d   : > { %1910 = vmatpush.bf16.msra.mxu1 %v1653_v35  ;;  %v1580_v44 = vld [vmem:[%s2726_s0 + $0x38] sm:$0xf]  ;;  %v1844_v45 = vld [vmem:[%s2726_s0 + $0x40] sm:$0xf0]  ;;  %v1662_v49 = vld [vmem:[%s2219_s20 + $0x28] sm:$0xf0]  ;;  %v2383_v59 = vor.u32 %v1859_v47, %v1640_v46 }
  0x6e   : > { %1084 = vmatpush.bf16.msrb.mxu2 %v1761_v32  ;;  %893 = vmatpush.bf16.msra.mxu0 %v1653_v35  ;;  %v1732_v32 = vld [vmem:[%s2219_s20 + $0xb0] sm:$0xf]  ;;  %v1670_v35 = vld [vmem:[%s2219_s20 + $0x38] sm:$0xf0]  ;;  %v1864_v48 = vld [vmem:[%s2219_s20 + $0x24] sm:$0xf]  ;;  %v2378_v54 = vor.u32 %v1844_v45, %v1580_v44 }
  0x6f   : > { %v1673_v38 = vor.u32 %v1866_v34, %v1670_v35  ;;  %v1733_v41 = vor.u32 %v1883_v33, %v1732_v32  ;;  %v1665_v52 = vor.u32 %v1864_v48, %v1662_v49  ;;  %v1724_v53 = vld [vmem:[%s2219_s20 + $0xa0] sm:$0xf]  ;;  %v1782_v58 = vld [vmem:[%s2219_s20 + $0x118] sm:$0xf0]  ;;  %v1862_v63 = vld [vmem:[%s2219_s20 + $0x14] sm:$0xf] }
  0x70   : > { %1035 = vmatpush.bf16.msrb.mxu3 %v1697_v50  ;;  %v1878_v50 = vld [vmem:[%s2219_s20 + $0x94] sm:$0xf]  ;;  %v1654_v0 = vld [vmem:[%s2219_s20 + $0x18] sm:$0xf0]  ;;  %v1716_v3 = vld [vmem:[%s2219_s20 + $0x90] sm:$0xf] }
  0x71   : > { %1911 = vmatpush.bf16.msra.mxu1 %v1645_v51  ;;  %v1657_v1 = vor.u32 %v1862_v63, %v1654_v0  ;;  %v1879_v4 = vld [vmem:[%s2219_s20 + $0x94] sm:$0xf0]  ;;  %v1876_v8 = vld [vmem:[%s2219_s20 + $0x84] sm:$0xf]  ;;  %v1710_v9 = vld [vmem:[%s2219_s20 + $0x88] sm:$0xf0] }
  0x72   : > { %1085 = vmatpush.bf16.msrb.mxu2 %v1753_v43  ;;  %894 = vmatpush.bf16.msra.mxu0 %v1645_v51  ;;  %v2357_v43 = vor.u32 %v1840_v40, %v1560_v39  ;;  %v1718_v51 = vld [vmem:[%s2219_s20 + $0x98] sm:$0xf0]  ;;  %v1717_v6 = vor.u32 %v1879_v4, %v1716_v3  ;;  %v1708_v12 = vld [vmem:[%s2219_s20 + $0x80] sm:$0xf]  ;;  %v1877_v13 = vld [vmem:[%s2219_s20 + $0x84] sm:$0xf0] }
  0x73   : > { %v1721_v55 = vor.u32 %v1878_v50, %v1718_v51  ;;  %v1855_v18 = vld [vmem:[%s2726_s0 + $0x98] sm:$0xf0]  ;;  %v1572_v19 = vld [vmem:[%s2726_s0 + $0x30] sm:$0xf]  ;;  %v1892_v25 = vld [vmem:[%s2219_s20 + $0x104] sm:$0xf] }
  0x74   : > { %915 = vmatmul.bf16.vlgmr.msra.gmra.mxu1 %v2298_v62  ;;  %1036 = vmatpush.bf16.msrb.mxu3 %v1689_v15  ;;  %v1709_v15 = vor.u32 %v1877_v13, %v1708_v12  ;;  %v1843_v20 = vld [vmem:[%s2726_s0 + $0x38] sm:$0xf0]  ;;  %v1858_v32 = vld [vmem:[%s2726_s0 + $0xb0] sm:$0xf0]  ;;  %v1584_v33 = vld [vmem:[%s2726_s0 + $0x48] sm:$0xf] }
  0x75   : > { %936 = vmatpush.bf16.msrb.mxu1 %v1765_v56  ;;  %895 = vmatmul.bf16.vlgmr.msra.gmra.mxu0 %v2303_v2  ;;  %v1881_v56 = vld [vmem:[%s2219_s20 + $0xa4] sm:$0xf0]  ;;  %v1573_v22 = vor.u32 %v1843_v20, %v1572_v19  ;;  %v1774_v26 = vld [vmem:[%s2219_s20 + $0x108] sm:$0xf0]  ;;  %v1846_v34 = vld [vmem:[%s2726_s0 + $0x50] sm:$0xf0] }
  0x76   : > { %1135 = vmatpush.bf16.msrb.mxu0 %v1809_v57  ;;  %1086 = vmatpush.bf16.msrb.mxu2 %v1745_v60  ;;  %v1894_v57 = vld [vmem:[%s2219_s20 + $0x114] sm:$0xf]  ;;  %v1725_v60 = vor.u32 %v1881_v56, %v1724_v53  ;;  %v1777_v28 = vor.u32 %v1892_v25, %v1774_v26  ;;  %v1585_v36 = vor.u32 %v1846_v34, %v1584_v33  ;;  %v1550_v40 = vld [vmem:[%s2726_s0 + $0xc] sm:$0xf0]  ;;  %v1839_v44 = vld [vmem:[%s2726_s0 + $0x1c] sm:$0xf] }
  0x77   : > { %v1785_v61 = vor.u32 %v1894_v57, %v1782_v58  ;;  %v1850_v37 = vld [vmem:[%s2726_s0 + $0x70] sm:$0xf0]  ;;  %v1836_v39 = vld [vmem:[%s2726_s0 + $0x4] sm:$0xf]  ;;  %v1574_v46 = vld [vmem:[%s2726_s0 + $0x3c] sm:$0xf0] }
  0x78   : > { %1037 = vmatpush.bf16.msrb.mxu3 %v1681_v24  ;;  %v1847_v24 = vld [vmem:[%s2726_s0 + $0x58] sm:$0xf0]  ;;  %v1586_v48 = vld [vmem:[%s2726_s0 + $0x54] sm:$0xf0]  ;;  %v1598_v51 = vld [vmem:[%s2726_s0 + $0x6c] sm:$0xf0] }
  0x79   : > { %937 = vmatpush.bf16.msrb.mxu1 %v1757_v5  ;;  %1811 = vmatmul.msk.bf16.gmra.mxu2 %vm862_vm0, %v2323_v14  ;;  %v1860_v5 = vld [vmem:[%s2219_s20 + $0x4] sm:$0xf]  ;;  %v1610_v63 = vld [vmem:[%s2726_s0 + $0x84] sm:$0xf0] }
  0x7a   : > { %1136 = vmatpush.bf16.msrb.mxu0 %v1801_v7  ;;  %1087 = vmatpush.bf16.msrb.mxu2 %v1737_v11  ;;  %v1646_v7 = vld [vmem:[%s2219_s20 + $0x8] sm:$0xf0]  ;;  %v1713_v11 = vor.u32 %v1876_v8, %v1710_v9 }
  0x7b   : > { %1816 = vmatmul.msk.bf16.gmra.mxu3 %vm862_vm0, %v2325_v17  ;;  %v1649_v10 = vor.u32 %v1860_v5, %v1646_v7 }
  0x7c   : > { %1038 = vmatpush.bf16.msrb.mxu3 %v1673_v38 }
  0x7d   : > { %938 = vmatpush.bf16.msrb.mxu1 %v1749_v16  ;;  %v1620_v16 = vld [vmem:[%s2726_s0 + $0x90] sm:$0xf] }
  0x7e   : > { %1088 = vmatpush.bf16.msrb.mxu2 %v1729_v29  ;;  %1137 = vmatpush.bf16.msrb.mxu0 %v1793_v30  ;;  %v2411_v21 = vor.u32 %v1855_v18, %v1620_v16  ;;  %v1632_v30 = vld [vmem:[%s2726_s0 + $0xa8] sm:$0xf] }
  0x7f   : > { %v2436_v35 = vor.u32 %v1858_v32, %v1632_v30 }
  0x80   : > { %1039 = vmatpush.bf16.msrb.mxu3 %v1665_v52 }
  0x81   : > { %939 = vmatpush.bf16.msrb.mxu1 %v1741_v23  ;;  %v1592_v23 = vld [vmem:[%s2726_s0 + $0x50] sm:$0xf] }
  0x82   : > { %1089 = vmatpush.bf16.msrb.mxu2 %v1721_v55  ;;  %1138 = vmatpush.bf16.msrb.mxu0 %v1785_v61  ;;  %v1593_v29 = vor.u32 %v1847_v24, %v1592_v23  ;;  %v1851_v61 = vld [vmem:[%s2726_s0 + $0x7c] sm:$0xf]  ;;  %v1634_v23 = vld [vmem:[%s2726_s0 + $0xb4] sm:$0xf0] }
  0x84   : > { %920 = vmatmul.bf16.gmra.mxu1 %v2355_v42  ;;  %1040 = vmatpush.bf16.msrb.mxu3 %v1657_v1  ;;  %v1613_v1 = vor.u32 %v1851_v61, %v1610_v63 }
  0x85   : > { %940 = vmatpush.bf16.msrb.mxu1 %v1733_v41  ;;  %900 = vmatmul.bf16.gmra.mxu0 %v2357_v43  ;;  %v1553_v41 = vor.u32 %v1836_v39, %v1550_v40 }
  0x86   : > { %1090 = vmatpush.bf16.msrb.mxu2 %v1713_v11  ;;  %1139 = vmatpush.bf16.msrb.mxu0 %v1777_v28  ;;  %v1622_v11 = vld [vmem:[%s2726_s0 + $0x9c] sm:$0xf0] }
  0x88   : > { %1041 = vmatpush.bf16.msrb.mxu3 %v1649_v10  ;;  %v1854_v10 = vld [vmem:[%s2726_s0 + $0x94] sm:$0xf] }
  0x89   : > { %941 = vmatpush.bf16.msrb.mxu1 %v1725_v60  ;;  %1812 = vmatmul.msk.bf16.gmra.mxu2 %vm862_vm0, %v2378_v54 }
  0x8b   : > { %1817 = vmatmul.msk.bf16.gmra.mxu3 %vm862_vm0, %v2383_v59 }
  0x8d   : > { %942 = vmatpush.bf16.msrb.mxu1 %v1717_v6 }
  0x91   : > { %943 = vmatpush.bf16.msrb.mxu1 %v1709_v15 }
  0x94   : > { %925 = vmatmul.bf16.gmra.mxu1 %v2411_v21 }
  0x95   : > { %905 = vmatmul.bf16.gmra.mxu0 %v1573_v22 }
  0x99   : > { %1813 = vmatmul.msk.bf16.gmra.mxu2 %vm862_vm0, %v1593_v29 }
  0x9b   : > { %1042 = vmatmul.bf16.vlgmr.msrb.gmra.mxu3 %v2303_v2  ;;  %v1604_v2 = vld [vmem:[%s2726_s0 + $0x68] sm:$0xf] }
  0x9c   : > { %v1605_v38 = vor.u32 %v1850_v37, %v1604_v2 }
  0xa4   : > { %930 = vmatmul.bf16.gmra.mxu1 %v2436_v35 }
  0xa5   : > { %910 = vmatmul.bf16.gmra.mxu0 %v1585_v36 }
  0xa9   : > { %1814 = vmatmul.msk.bf16.gmra.mxu2 %vm862_vm0, %v1605_v38 }
  0xab   : > { %1047 = vmatmul.bf16.gmra.mxu3 %v2357_v43  ;;  %v1562_v43 = vld [vmem:[%s2726_s0 + $0x24] sm:$0xf0] }
  0xac   : > { %v1565_v45 = vor.u32 %v1839_v44, %v1562_v43 }
  0xb4   : > { %944 = vmatmul.bf16.vlgmr.msrb.gmra.mxu1 %v1553_v41 }
  0xb5   : > { %1818 = vmatmul.msk.bf16.vlgmr.msrb.gmra.mxu0 %vm862_vm0, %v2259_v27  ;;  %v1842_v27 = vld [vmem:[%s2726_s0 + $0x34] sm:$0xf] }
  0xb6   : > { %v1577_v47 = vor.u32 %v1842_v27, %v1574_v46 }
  0xb9   : > { %1091 = vmatmul.bf16.vlgmr.msrb.gmra.mxu2 %v1553_v41 }
  0xbb   : > { %1052 = vmatmul.bf16.gmra.mxu3 %v1573_v22  ;;  %v1857_v22 = vld [vmem:[%s2726_s0 + $0xac] sm:$0xf] }
  0xbc   : > { %v1637_v25 = vor.u32 %v1857_v22, %v1634_v23 }
  0xc4   : > { %949 = vmatmul.bf16.gmra.mxu1 %v1565_v45 }
  0xc5   : > { %1819 = vmatmul.msk.bf16.gmra.mxu0 %vm862_vm0, %v2323_v14  ;;  %v1845_v14 = vld [vmem:[%s2726_s0 + $0x4c] sm:$0xf] }
  0xc6   : > { %v1589_v49 = vor.u32 %v1845_v14, %v1586_v48 }
  0xc9   : > { %1096 = vmatmul.bf16.gmra.mxu2 %v1565_v45 }
  0xcb   : > { %1057 = vmatmul.bf16.gmra.mxu3 %v1585_v36 }
  0xd4   : > { %954 = vmatmul.bf16.gmra.mxu1 %v1577_v47 }
  0xd5   : > { %1820 = vmatmul.msk.bf16.gmra.mxu0 %vm862_vm0, %v2378_v54 }
  0xd9   : > { %1101 = vmatmul.bf16.gmra.mxu2 %v1577_v47 }
  0xdb   : > { %1062 = vmatmul.bf16.gmra.mxu3 %v2298_v62  ;;  %v1848_v62 = vld [vmem:[%s2726_s0 + $0x64] sm:$0xf] }
  0xdc   : > { %v1601_v53 = vor.u32 %v1848_v62, %v1598_v51 }
  0xe4   : > { %959 = vmatmul.bf16.gmra.mxu1 %v1589_v49 }
  0xe5   : > { %1821 = vmatmul.msk.bf16.gmra.mxu0 %vm862_vm0, %v1593_v29 }
  0xe9   : > { %1106 = vmatmul.bf16.gmra.mxu2 %v1589_v49 }
  0xeb   : > { %1067 = vmatmul.bf16.gmra.mxu3 %v2355_v42 }
  0xec   : > { %v2480_v50 = vpop.f32.mrf.mxu2 }
  0xee   : > { %v2488_v52 = vpop.f32.mrf.mxu3 }
  0xf1   : > { %v2490_v54 = vpop.f32.mrf.mxu1 }
  0xf2   : > { %v896_v55 = vpop.f32.mrf.mxu0 }
  0xf4   : > { %v996_v56 = vpop.f32.mrf.mxu2  ;;  %964 = vmatmul.bf16.gmra.mxu1 %v1601_v53 }
  0xf5   : > { %1822 = vmatmul.msk.bf16.gmra.mxu0 %vm862_vm0, %v1605_v38 }
  0xf6   : > { %v2493_v42 = vpop.f32.mrf.mxu3 }
  0xf9   : > { %1111 = vmatmul.bf16.gmra.mxu2 %v1601_v53  ;;  %v2495_v57 = vpop.f32.mrf.mxu1 }
  0xfa   : > { %v898_v58 = vpop.f32.mrf.mxu0 }
  0xfb   : > { %1072 = vmatmul.bf16.gmra.mxu3 %v2411_v21 }
  0xfc   : > { %v999_v60 = vpop.f32.mrf.mxu2 }
  0xfe   : > { %v2504_v0 = vpop.f32.mrf.mxu3 }
 0x101   : > { %v2506_v3 = vpop.f32.mrf.mxu1 }
 0x102   : > { %v901_v4 = vpop.f32.mrf.mxu0 }
 0x104   : > { %v1001_v5 = vpop.f32.mrf.mxu2  ;;  %969 = vmatmul.bf16.gmra.mxu1 %v1613_v1 }
 0x105   : > { %1823 = vmatmul.msk.bf16.gmra.mxu0 %vm862_vm0, %v2263_v31  ;;  %v1625_v31 = vor.u32 %v1854_v10, %v1622_v11 }
 0x106   : > { %v2510_v6 = vpop.f32.mrf.mxu3 }
 0x109   : > { %1116 = vmatmul.bf16.gmra.mxu2 %v1613_v1  ;;  %v2512_v7 = vpop.f32.mrf.mxu1 }
 0x10a   : > { %v903_v8 = vpop.f32.mrf.mxu0 }
 0x10b   : > { %1077 = vmatmul.bf16.gmra.mxu3 %v2436_v35 }
 0x10c   : > { %v1004_v9 = vpop.f32.mrf.mxu2 }
 0x10e   : > { %v2521_v12 = vpop.f32.mrf.mxu3 }
 0x111   : > { %v2523_v13 = vpop.f32.mrf.mxu1 }
 0x112   : > { %v906_v15 = vpop.f32.mrf.mxu0 }
 0x114   : > { %v2525_v16 = vpop.f32.mrf.mxu2  ;;  %974 = vmatmul.bf16.gmra.mxu1 %v1625_v31 }
 0x115   : > { %1824 = vmatmul.msk.bf16.gmra.mxu0 %vm862_vm0, %v2325_v17 }
 0x116   : > { %v2529_v18 = vpop.f32.mrf.mxu3 }
 0x119   : > { %1121 = vmatmul.bf16.gmra.mxu2 %v1625_v31  ;;  %v2531_v19 = vpop.f32.mrf.mxu1 }
 0x11a   : > { %v908_v20 = vpop.f32.mrf.mxu0 }
 0x11c   : > { %v1009_v21 = vpop.f32.mrf.mxu2 }
 0x11e   : > { %v1043_v24 = vpop.f32.mrf.mxu3 }
 0x121   : > { %v2539_v26 = vpop.f32.mrf.mxu1 }
 0x122   : > { %v911_v17 = vpop.f32.mrf.mxu0 }
 0x124   : > { %v1011_v28 = vpop.f32.mrf.mxu2  ;;  %979 = vmatmul.bf16.gmra.mxu1 %v1637_v25 }
 0x125   : > { %1825 = vmatmul.msk.bf16.gmra.mxu0 %vm862_vm0, %v2383_v59 }
 0x126   : > { %v1045_v29 = vpop.f32.mrf.mxu3 }
 0x129   : > { %1126 = vmatmul.bf16.gmra.mxu2 %v1637_v25  ;;  %v2543_v30 = vpop.f32.mrf.mxu1 }
 0x12a   : > { %v913_v32 = vpop.f32.mrf.mxu0 }
 0x12c   : > { %v2545_v33 = vpop.f32.mrf.mxu2 }
 0x12e   : > { %v1048_v2 = vpop.f32.mrf.mxu3 }
 0x131   : > { %v945_v34 = vpop.f32.mrf.mxu1 }
 0x132   : > { %v946_v35 = vadd.f32 %v945_v34, %v896_v55  ;;  %v1141_v36 = vpop.f32.mrf.mxu0 }
 0x134   : > { %v995_v37 = vadd.f32 %v2480_v50, %v946_v35  ;;  %v2548_v38 = vpop.f32.mrf.mxu2 }
 0x136   : > { %v1050_v43 = vpop.f32.mrf.mxu3 }
 0x139   : > { %v947_v39 = vpop.f32.mrf.mxu1 }
 0x13a   : > { %v948_v40 = vadd.f32 %v947_v39, %v898_v58  ;;  %v1143_v41 = vpop.f32.mrf.mxu0 }
 0x13c   : > { %v997_v44 = vadd.f32 %v996_v56, %v948_v40  ;;  %v1092_v59 = vpop.f32.mrf.mxu2 }
 0x13d   : > { %v1093_v45 = vadd.f32 %v1092_v59, %v1043_v24 }
 0x13e   : > { %v1053_v51 = vpop.f32.mrf.mxu3 }
 0x13f   : > { %v1142_v27 = vadd.f32 %v1141_v36, %v1093_v45 }
 0x141   : > { %v950_v46 = vpop.f32.mrf.mxu1 }
 0x142   : > { %v951_v47 = vadd.f32 %v950_v46, %v901_v4  ;;  %v1146_v14 = vpop.f32.mrf.mxu0 }
 0x144   : > { %v1000_v48 = vadd.f32 %v999_v60, %v951_v47  ;;  %v1094_v49 = vpop.f32.mrf.mxu2 }
 0x145   : > { %v1095_v62 = vadd.f32 %v1094_v49, %v1045_v29 }
 0x146   : > { %v1055_v10 = vpop.f32.mrf.mxu3 }
 0x147   : > { %v2550_v53 = vadd.f32 %v1143_v41, %v1095_v62 }
 0x149   : > { %v952_v50 = vpop.f32.mrf.mxu1 }
 0x14a   : > { %v953_v55 = vadd.f32 %v952_v50, %v903_v8  ;;  %v1148_v61 = vpop.f32.mrf.mxu0 }
 0x14c   : > { %v2552_v63 = vadd.f32 %v1001_v5, %v953_v55  ;;  %v1097_v58 = vpop.f32.mrf.mxu2 }
 0x14d   : > { %v1098_v56 = vadd.f32 %v1097_v58, %v1048_v2 }
 0x14e   : > { %v2560_v8 = vpop.f32.mrf.mxu3 }
 0x14f   : > { %v2554_v1 = vadd.f32 %v1146_v14, %v1098_v56 }
 0x151   : > { %v955_v11 = vpop.f32.mrf.mxu1 }
 0x152   : > { %v956_v31 = vadd.f32 %v955_v11, %v906_v15  ;;  %v1151_v4 = vpop.f32.mrf.mxu0  ;;  %v1183_v11 = vmul.f32 0.5, %v997_v44  ;;  %v1184_v44 = vmul.f32 0.5, %v2550_v53 }
 0x154   : > { %v1005_v22 = vadd.f32 %v1004_v9, %v956_v31  ;;  %v1099_v60 = vpop.f32.mrf.mxu2 }
 0x155   : > { %v1100_v23 = vadd.f32 %v1099_v60, %v1050_v43  ;;  %v1182_v60 = vmul.f32 0.5, %v1142_v27 }
 0x156   : > { %v2565_v9 = vpop.f32.mrf.mxu3  ;;  %v1189_v58 = vmul.f32 0.5, %v1005_v22 }
 0x157   : > { %v2556_v24 = vadd.f32 %v1148_v61, %v1100_v23  ;;  %v1181_v61 = vmul.f32 0.5, %v995_v37 }
 0x159   : > { %v957_v25 = vpop.f32.mrf.mxu1  ;;  %1943 = vtanh.f32 %v1181_v61 }
 0x15a   : > { %v958_v29 = vadd.f32 %v957_v25, %v908_v20  ;;  %v2558_v34 = vpop.f32.mrf.mxu0  ;;  %1945 = vtanh.f32 %v1189_v58 }
 0x15b   : > { %1947 = vtanh.f32 %v1183_v11  ;;  %v1187_v11 = vmul.f32 0.5, %v2552_v63  ;;  %v1285_v63 = vld [vmem:[%s2615_s15] sm:$0xff] }
 0x15c   : > { %v1007_v5 = vadd.f32 %v2525_v16, %v958_v29  ;;  %v1102_v35 = vpop.f32.mrf.mxu2  ;;  %1949 = vtanh.f32 %v1182_v60 }
 0x15d   : > { %v1103_v31 = vadd.f32 %v1102_v35, %v1053_v51 }
 0x15e   : > { %v2571_v46 = vpop.f32.mrf.mxu3  ;;  %v1191_v29 = vmul.f32 0.5, %v1007_v5 }
 0x15f   : > { %v1152_v37 = vadd.f32 %v1151_v4, %v1103_v31  ;;  %v1944_v22 = vpop.eup %1943 }
 0x160   : > { %1951 = vtanh.f32 %v1191_v29 }
 0x161   : > { %v960_v36 = vpop.f32.mrf.mxu1 }
 0x162   : > { %v961_v2 = vadd.f32 %v960_v36, %v911_v17  ;;  %v2563_v39 = vpop.f32.mrf.mxu0 }
 0x164   : > { %v1010_v15 = vadd.f32 %v1009_v21, %v961_v2  ;;  %v1104_v40 = vpop.f32.mrf.mxu2  ;;  %v1185_v2 = vmul.f32 0.5, %v1000_v48  ;;  %v1190_v48 = vmul.f32 0.5, %v1152_v37 }
 0x165   : > { %v1105_v27 = vadd.f32 %v1104_v40, %v1055_v10 }
 0x166   : > { %v2577_v17 = vpop.f32.mrf.mxu3  ;;  %1953 = vtanh.f32 %v1185_v2  ;;  %v1193_v4 = vmul.f32 0.5, %v1010_v15  ;;  %v1186_v15 = vmul.f32 0.5, %v2554_v1 }
 0x167   : > { %1955 = vtanh.f32 %v1184_v44 }
 0x169   : > { %v962_v41 = vpop.f32.mrf.mxu1 }
 0x16a   : > { %v963_v59 = vadd.f32 %v962_v41, %v913_v32  ;;  %v2567_v43 = vpop.f32.mrf.mxu0 }
 0x16c   : > { %v2569_v20 = vadd.f32 %v1011_v28, %v963_v59  ;;  %v1107_v45 = vpop.f32.mrf.mxu2  ;;  %v1946_v59 = vpop.eup %1945 }
 0x16d   : > { %v1948_v10 = vpop.eup %1947 }
 0x16e   : > { %v2583_v32 = vpop.f32.mrf.mxu3  ;;  %v1231_v2 = vmul.f32 0.5, %v1948_v10  ;;  %v1188_v10 = vmul.f32 0.5, %v2556_v24 }
 0x171   : > { %v965_v47 = vpop.f32.mrf.mxu1 }
 0x172   : > { %v2573_v16 = vpop.f32.mrf.mxu0  ;;  %v966_v36 = vadd.f32 %v965_v47, %v2490_v54  ;;  %v1229_v54 = vmul.f32 0.5, %v1944_v22  ;;  %v1237_v47 = vmul.f32 0.5, %v1946_v59 }
 0x174   : > { %v2575_v14 = vpop.f32.mrf.mxu2  ;;  %v1015_v51 = vadd.f32 %v2545_v33, %v966_v36  ;;  %v1154_v33 = vadd.f32 %v2558_v34, %v1105_v27  ;;  %v1253_v29 = vadd.f32 0.5, %v1229_v54 }
 0x176   : > { %v2591_v23 = vpop.f32.mrf.mxu3  ;;  %v1197_v40 = vmul.f32 0.5, %v1015_v51  ;;  %v1192_v37 = vmul.f32 0.5, %v1154_v33 }
 0x179   : > { %v967_v21 = vpop.f32.mrf.mxu1 }
 0x17a   : > { %v2579_v49 = vpop.f32.mrf.mxu0  ;;  %v968_v61 = vadd.f32 %v967_v21, %v2495_v57  ;;  %v1108_v21 = vadd.f32 %v1107_v45, %v2560_v8 }
 0x17c   : > { %v1112_v62 = vpop.f32.mrf.mxu2  ;;  %v1017_v36 = vadd.f32 %v2548_v38, %v968_v61  ;;  %v1195_v38 = vmul.f32 0.5, %v2569_v20  ;;  %v1157_v54 = vadd.f32 %v2563_v39, %v1108_v21  ;;  %v1255_v20 = vadd.f32 0.5, %v1231_v2 }
 0x17d   : > { %v1113_v22 = vadd.f32 %v1112_v62, %v2571_v46  ;;  %v1110_v2 = vadd.f32 %v2575_v14, %v2565_v9  ;;  %v1286_v9 = vld [vmem:[%s2615_s15 + $0x8] sm:$0xff] }
 0x17e   : > { %v1073_v31 = vpop.f32.mrf.mxu3 }
 0x181   : > { %v2581_v50 = vpop.f32.mrf.mxu1 }
 0x182   : > { %v2587_v55 = vpop.f32.mrf.mxu0  ;;  %v971_v45 = vadd.f32 %v2581_v50, %v2506_v3 }
 0x184   : > { %v2585_v28 = vpop.f32.mrf.mxu2  ;;  %v1020_v39 = vadd.f32 %v2488_v52, %v971_v45 }
 0x189   : > { %v2589_v56 = vpop.f32.mrf.mxu1 }
 0x18a   : > { %v2596_v41 = vpop.f32.mrf.mxu0 }
 0x18c   : > { %v2593_v25 = vpop.f32.mrf.mxu2 }
 0x191   : > { %v975_v35 = vpop.f32.mrf.mxu1 }
 0x192   : > { %v976_v5 = vadd.f32 %v975_v35, %v2523_v13  ;;  %v1950_v13 = vpop.eup %1949  ;;  %v1171_v34 = vpop.f32.mrf.mxu0 }
 0x193   : > { %v1952_v60 = vpop.eup %1951  ;;  %v1230_v1 = vmul.f32 0.5, %v1950_v13 }
 0x194   : > { %v1025_v58 = vadd.f32 %v2504_v0, %v976_v5  ;;  %v2607_v53 = vpop.f32.mrf.mxu2  ;;  %v1954_v57 = vpop.eup %1953  ;;  %v1261_v0 = vadd.f32 0.5, %v1237_v47  ;;  %v1239_v44 = vmul.f32 0.5, %v1952_v60 }
 0x195   : > { %v1956_v51 = vpop.eup %1955  ;;  %v1233_v8 = vmul.f32 0.5, %v1954_v57  ;;  %v1254_v13 = vadd.f32 0.5, %v1230_v1  ;;  %v1075_v60 = vpop.f32.mrf.mxu3 }
 0x196   : > { %1957 = vtanh.f32 %v1025_v58  ;;  %v1293_v5 = vmul.f32 %v1285_v63, %v1261_v0  ;;  %v1263_v3 = vadd.f32 0.5, %v1239_v44  ;;  %v1201_v63 = vmul.f32 0.5, %v1020_v39 }
 0x197   : > { %1959 = vtanh.f32 %v1190_v48  ;;  %v1199_v48 = vmul.f32 0.5, %v1017_v36 }
 0x198   : > { %1961 = vtanh.f32 %v1193_v4 }
 0x199   : > { %1963 = vtanh.f32 %v1197_v40  ;;  %v977_v59 = vpop.f32.mrf.mxu1 }
 0x19a   : > { %1965 = vtanh.f32 %v1187_v11  ;;  %v978_v27 = vadd.f32 %v977_v59, %v2531_v19  ;;  %v1162_v19 = vadd.f32 %v2573_v16, %v1113_v22  ;;  %v1287_v11 = vld [vmem:[%s2615_s15 + $0x10] sm:$0xff]  ;;  %v1194_v16 = vmul.f32 0.5, %v1157_v54  ;;  %v1173_v36 = vpop.f32.mrf.mxu0 }
 0x19b   : > { %1967 = vtanh.f32 %v1186_v15  ;;  %v973_v59 = vadd.f32 %v2589_v56, %v2512_v7  ;;  %v1159_v54 = vadd.f32 %v2567_v43, %v1110_v2 }
 0x19c   : > { %v1958_v35 = vpop.eup %1957  ;;  %v1027_v46 = vadd.f32 %v2510_v6, %v978_v27  ;;  %v1122_v62 = vpop.f32.mrf.mxu2  ;;  %1969 = vtanh.f32 %v1192_v37  ;;  %v1198_v57 = vmul.f32 0.5, %v1162_v19 }
 0x19d   : > { %v1960_v47 = vpop.eup %1959  ;;  %v1301_v4 = vmul.f32 %v1958_v35, %v1253_v29  ;;  %v1123_v61 = vadd.f32 %v1122_v62, %v1073_v31  ;;  %v1115_v31 = vadd.f32 %v2585_v28, %v2577_v17  ;;  %v2635_v29 = vadd.f32 0.5, %v1233_v8 }
 0x19e   : > { %v1962_v58 = vpop.eup %1961  ;;  %1971 = vtanh.f32 %v1027_v46  ;;  %v1238_v15 = vmul.f32 0.5, %v1960_v47  ;;  %v1295_v28 = vmul.f32 %v1287_v11, %v1263_v3  ;;  %v1232_v35 = vmul.f32 0.5, %v1956_v51 }
 0x19f   : > { %v1964_v50 = vpop.eup %1963  ;;  %1973 = vtanh.f32 %v1195_v38  ;;  %v1309_v6 = vadd.f32 %v1301_v4, %v1293_v5  ;;  %v1172_v33 = vadd.f32 %v1171_v34, %v1123_v61  ;;  %v1241_v0 = vmul.f32 0.5, %v1962_v58 }
 0x1a0   : > { %v2628_v40 = vpop.eup %1965  ;;  %1975 = vtanh.f32 %v1199_v48  ;;  %v1245_v21 = vmul.f32 0.5, %v1964_v50  ;;  %v1164_v22 = vadd.f32 %v2579_v49, %v1115_v31  ;;  %v1289_v48 = vld [vmem:[%s2615_s15 + $0x20] sm:$0xff]  ;;  %v1022_v62 = vadd.f32 %v2493_v42, %v973_v59  ;;  %v1078_v42 = vpop.f32.mrf.mxu3  ;;  %v1291_v59 = vld [vmem:[%s2615_s15 + $0x30] sm:$0xff] }
 0x1a1   : > { %v2633_v24 = vpop.eup %1967  ;;  %1977 = vtanh.f32 %v1309_v6  ;;  %1333 = vst [vmem:[%s2638_s13] sm:$0xff] %v1309_v6  ;;  %v980_v52 = vpop.f32.mrf.mxu1  ;;  %v1265_v14 = vadd.f32 0.5, %v1241_v0  ;;  %v1118_v51 = vadd.f32 %v2593_v25, %v2583_v32  ;;  %v1196_v6 = vmul.f32 0.5, %v1159_v54 }
 0x1a2   : > { %1979 = vtanh.f32 %v1172_v33  ;;  %v981_v34 = vadd.f32 %v980_v52, %v2539_v26  ;;  %v1970_v17 = vpop.eup %1969  ;;  %v1262_v26 = vadd.f32 0.5, %v1238_v15  ;;  %v1269_v5 = vadd.f32 0.5, %v1245_v21  ;;  %v1176_v31 = vpop.f32.mrf.mxu0 }
 0x1a3   : > { %1981 = vtanh.f32 %v1188_v10  ;;  %v1200_v46 = vmul.f32 0.5, %v1164_v22  ;;  %v1240_v61 = vmul.f32 0.5, %v1970_v17  ;;  %v1256_v10 = vadd.f32 0.5, %v1232_v35 }
 0x1a4   : > { %v1972_v37 = vpop.eup %1971  ;;  %1983 = vtanh.f32 %v1194_v16  ;;  %v1030_v1 = vadd.f32 %v2521_v12, %v981_v34  ;;  %v1124_v44 = vpop.f32.mrf.mxu2  ;;  %v1294_v4 = vmul.f32 %v1286_v9, %v1262_v26  ;;  %v1297_v50 = vmul.f32 %v1289_v48, %v1265_v14 }
 0x1a5   : > { %v1974_v27 = vpop.eup %1973  ;;  %1985 = vtanh.f32 %v1198_v57  ;;  %v1303_v8 = vmul.f32 %v1972_v37, %v1255_v20  ;;  %v1125_v38 = vadd.f32 %v1124_v44, %v1075_v60  ;;  %v1203_v11 = vmul.f32 0.5, %v1022_v62 }
 0x1a6   : > { %v1976_v45 = vpop.eup %1975  ;;  %1987 = vtanh.f32 %v1030_v1  ;;  %v1243_v39 = vmul.f32 0.5, %v1974_v27  ;;  %v1167_v16 = vadd.f32 %v2587_v55, %v1118_v51  ;;  %v1264_v52 = vadd.f32 0.5, %v1240_v61 }
 0x1a7   : > { %v1978_v49 = vpop.eup %1977  ;;  %1989 = vtanh.f32 %v1201_v63  ;;  %v1311_v7 = vadd.f32 %v1303_v8, %v1295_v28  ;;  %v1174_v12 = vadd.f32 %v1173_v36, %v1125_v38  ;;  %v1247_v3 = vmul.f32 0.5, %v1976_v45  ;;  %v1288_v36 = vld [vmem:[%s2615_s15 + $0x18] sm:$0xff] }
 0x1a8   : > { %v1980_v56 = vpop.eup %1979  ;;  %v1325_v47 = vmul.f32 %v1978_v49, %v1269_v5  ;;  %v1235_v21 = vmul.f32 0.5, %v2628_v40  ;;  %v1267_v28 = vadd.f32 0.5, %v1243_v39  ;;  %v1202_v37 = vmul.f32 0.5, %v1167_v16  ;;  %v1080_v49 = vpop.f32.mrf.mxu3 }
 0x1a9   : > { %v2654_v19 = vpop.eup %1981  ;;  %1991 = vtanh.f32 %v1311_v7  ;;  %1335 = vst [vmem:[%s2638_s13 + $0x10] sm:$0xff] %v1311_v7  ;;  %v1302_v43 = vmul.f32 %v1980_v56, %v1254_v13  ;;  %v982_v58 = vpop.f32.mrf.mxu1  ;;  %v1271_v34 = vadd.f32 0.5, %v1247_v3  ;;  %v1296_v40 = vmul.f32 %v1288_v36, %v1264_v52 }
 0x1aa   : > { %v1984_v20 = vpop.eup %1983  ;;  %1341 = vst [vmem:[%s2658_s26] sm:$0xff] %v1325_v47  ;;  %1993 = vtanh.f32 %v1174_v12  ;;  %v983_v32 = vadd.f32 %v982_v58, %v2543_v30  ;;  %v1259_v45 = vadd.f32 0.5, %v1235_v21  ;;  %v1234_v35 = vmul.f32 0.5, %v2633_v24  ;;  %v1290_v24 = vld [vmem:[%s2615_s15 + $0x28] sm:$0xff]  ;;  %v1178_v47 = vpop.f32.mrf.mxu0 }
 0x1ab   : > { %v1986_v25 = vpop.eup %1985  ;;  %v1310_v33 = vadd.f32 %v1302_v43, %v1294_v4  ;;  %1995 = vtanh.f32 %v1200_v46  ;;  %v1242_v1 = vmul.f32 0.5, %v1984_v20 }
 0x1ac   : > { %v1988_v13 = vpop.eup %1987  ;;  %v1032_v60 = vadd.f32 %v2529_v18, %v983_v32  ;;  %v1127_v15 = vpop.f32.mrf.mxu2  ;;  %v1246_v17 = vmul.f32 0.5, %v1986_v25  ;;  %v1258_v61 = vadd.f32 0.5, %v1234_v35 }
 0x1ad   : > { %v1990_v57 = vpop.eup %1989  ;;  %1997 = vtanh.f32 %v1310_v33  ;;  %1334 = vst [vmem:[%s2638_s13 + $0x8] sm:$0xff] %v1310_v33  ;;  %v1305_v30 = vmul.f32 %v1988_v13, %v2635_v29  ;;  %v1128_v0 = vadd.f32 %v1127_v15, %v1078_v42  ;;  %v1120_v29 = vadd.f32 %v2607_v53, %v2591_v23 }
 0x1ae   : > { %1999 = vtanh.f32 %v1032_v60  ;;  %v1270_v26 = vadd.f32 0.5, %v1246_v17  ;;  %v1249_v8 = vmul.f32 0.5, %v1990_v57  ;;  %v1299_v53 = vmul.f32 %v1291_v59, %v1267_v28 }
 0x1af   : > { %v1992_v55 = vpop.eup %1991  ;;  %2001 = vtanh.f32 %v1196_v6  ;;  %v1313_v18 = vadd.f32 %v1305_v30, %v1297_v50  ;;  %v1177_v2 = vadd.f32 %v1176_v31, %v1128_v0  ;;  %v1169_v14 = vadd.f32 %v2596_v41, %v1120_v29  ;;  %v1292_v31 = vld [vmem:[%s2615_s15 + $0x38] sm:$0xff] }
 0x1b0   : > { %v1994_v63 = vpop.eup %1993  ;;  %2003 = vtanh.f32 %v1203_v11  ;;  %v1327_v22 = vmul.f32 %v1992_v55, %v1271_v34  ;;  %v1266_v12 = vadd.f32 0.5, %v1242_v1  ;;  %v1273_v62 = vadd.f32 0.5, %v1249_v8 }
 0x1b1   : > { %2005 = vtanh.f32 %v1313_v18  ;;  %1337 = vst [vmem:[%s2638_s13 + $0x20] sm:$0xff] %v1313_v18  ;;  %v1304_v44 = vmul.f32 %v1994_v63, %v1256_v10  ;;  %v1996_v27 = vpop.eup %1995  ;;  %v1204_v20 = vmul.f32 0.5, %v1169_v14  ;;  %v1236_v33 = vmul.f32 0.5, %v2654_v19  ;;  %v1375_v29 = vld [vmem:[%s2658_s26] sm:$0xff] (%p2107_p5) }
 0x1b2   : > { %1343 = vst [vmem:[%s2658_s26 + $0x10] sm:$0xff] %v1327_v22  ;;  %2007 = vtanh.f32 %v1177_v2  ;;  %v1248_v51 = vmul.f32 0.5, %v1996_v27  ;;  %v1298_v3 = vmul.f32 %v1290_v24, %v1266_v12 }
 0x1b3   : > { %v1998_v38 = vpop.eup %1997  ;;  %v1312_v9 = vadd.f32 %v1304_v44, %v1296_v40  ;;  %2009 = vtanh.f32 %v1202_v37  ;;  %v1260_v52 = vadd.f32 0.5, %v1236_v33  ;;  %1376 = vst [vmem:[%s1362_s30] sm:$0xff] (%p2107_p5), %v1375_v29 }
 0x1b4   : > { %v2000_v23 = vpop.eup %1999  ;;  %v1326_v5 = vmul.f32 %v1998_v38, %v1270_v26  ;;  %v1129_v54 = vpop.f32.mrf.mxu2  ;;  %v1272_v50 = vadd.f32 0.5, %v1248_v51 }
 0x1b5   : > { %v2002_v7 = vpop.eup %2001  ;;  %2011 = vtanh.f32 %v1312_v9  ;;  %1336 = vst [vmem:[%s2638_s13 + $0x18] sm:$0xff] %v1312_v9  ;;  %v1307_v56 = vmul.f32 %v2000_v23, %v1259_v45  ;;  %v1130_v48 = vadd.f32 %v1129_v54, %v1080_v49 }
 0x1b6   : > { %v2004_v46 = vpop.eup %2003  ;;  %1342 = vst [vmem:[%s2658_s26 + $0x8] sm:$0xff] %v1326_v5  ;;  %v1244_v42 = vmul.f32 0.5, %v2002_v7 }
 0x1b7   : > { %v2006_v4 = vpop.eup %2005  ;;  %v1315_v41 = vadd.f32 %v1307_v56, %v1299_v53  ;;  %v1179_v43 = vadd.f32 %v1178_v47, %v1130_v48  ;;  %v1251_v39 = vmul.f32 0.5, %v2004_v46 }
 0x1b8   : > { %v2008_v58 = vpop.eup %2007  ;;  %v1329_v10 = vmul.f32 %v2006_v4, %v1273_v62  ;;  %v1268_v16 = vadd.f32 0.5, %v1244_v42 }
 0x1b9   : > { %2013 = vtanh.f32 %v1315_v41  ;;  %1339 = vst [vmem:[%s2638_s13 + $0x30] sm:$0xff] %v1315_v41  ;;  %v1306_v32 = vmul.f32 %v2008_v58, %v1258_v61  ;;  %v2010_v25 = vpop.eup %2009  ;;  %v1275_v60 = vadd.f32 0.5, %v1251_v39  ;;  %v1379_v40 = vld [vmem:[%s2658_s26 + $0x10] sm:$0xff] (%p2107_p5) }
 0x1ba   : > { %1345 = vst [vmem:[%s2658_s26 + $0x20] sm:$0xff] %v1329_v10  ;;  %2015 = vtanh.f32 %v1179_v43  ;;  %v1250_v15 = vmul.f32 0.5, %v2010_v25  ;;  %v1300_v21 = vmul.f32 %v1292_v31, %v1268_v16 }
 0x1bb   : > { %v2012_v6 = vpop.eup %2011  ;;  %v1314_v13 = vadd.f32 %v1306_v32, %v1298_v3  ;;  %2017 = vtanh.f32 %v1204_v20  ;;  %1380 = vst [vmem:[%s1362_s30 + $0x20] sm:$0xff] (%p2107_p5), %v1379_v40 }
 0x1bc   : > { %v1328_v11 = vmul.f32 %v2012_v6, %v1272_v50  ;;  %v1274_v34 = vadd.f32 0.5, %v1250_v15 }
 0x1bd   : > { %2019 = vtanh.f32 %v1314_v13  ;;  %1338 = vst [vmem:[%s2638_s13 + $0x28] sm:$0xff] %v1314_v13  ;;  %v1377_v22 = vld [vmem:[%s2658_s26 + $0x8] sm:$0xff] (%p2107_p5) }
 0x1be   : > { %1344 = vst [vmem:[%s2658_s26 + $0x18] sm:$0xff] %v1328_v11 }
 0x1bf   : > { %v2014_v57 = vpop.eup %2013  ;;  %1378 = vst [vmem:[%s1362_s30 + $0x8] sm:$0xff] (%p2107_p5), %v1377_v22 }
 0x1c0   : > { %v2016_v30 = vpop.eup %2015  ;;  %v1331_v0 = vmul.f32 %v2014_v57, %v1275_v60 }
 0x1c1   : > { %v1308_v19 = vmul.f32 %v2016_v30, %v1260_v52  ;;  %v2018_v36 = vpop.eup %2017  ;;  %v1383_v1 = vld [vmem:[%s2658_s26 + $0x20] sm:$0xff] (%p2107_p5) }
 0x1c2   : > { %1347 = vst [vmem:[%s2658_s26 + $0x30] sm:$0xff] %v1331_v0  ;;  %v1252_v18 = vmul.f32 0.5, %v2018_v36 }
 0x1c3   : > { %v2020_v17 = vpop.eup %2019  ;;  %v1316_v55 = vadd.f32 %v1308_v19, %v1300_v21  ;;  %1384 = vst [vmem:[%s1362_s30 + $0x40] sm:$0xff] (%p2107_p5), %v1383_v1 }
 0x1c4   : > { %v1330_v28 = vmul.f32 %v2020_v17, %v1274_v34  ;;  %v1276_v2 = vadd.f32 0.5, %v1252_v18 }
 0x1c5   : > { %2021 = vtanh.f32 %v1316_v55  ;;  %1340 = vst [vmem:[%s2638_s13 + $0x38] sm:$0xff] %v1316_v55  ;;  %v1381_v59 = vld [vmem:[%s2658_s26 + $0x18] sm:$0xff] (%p2107_p5) }
 0x1c6   : > { %1346 = vst [vmem:[%s2658_s26 + $0x28] sm:$0xff] %v1330_v28 }
 0x1c7   : > { %1382 = vst [vmem:[%s1362_s30 + $0x28] sm:$0xff] (%p2107_p5), %v1381_v59 }
 0x1c9   : > { %v1387_v27 = vld [vmem:[%s2658_s26 + $0x30] sm:$0xff] (%p2107_p5) }
 0x1ca   : > { %1359 = sbr.rel (!%p2107_p5) target bundleno = 471 (0x1d7), region = 97  ;;  %1388 = vst [vmem:[%s1362_s30 + $0x60] sm:$0xff] (%p2107_p5), %v1387_v27 }
 0x1cb   : > { %v2022_v63 = vpop.eup %2021 }
 0x1cc   : > { %v1332_v37 = vmul.f32 %v2022_v63, %v1276_v2 }
 0x1cd   : > { %v1385_v44 = vld [vmem:[%s2658_s26 + $0x28] sm:$0xff] (%p2107_p5) }
 0x1ce   : > { %1348 = vst [vmem:[%s2658_s26 + $0x38] sm:$0xff] %v1332_v37 }
 0x1cf   : > { %1386 = vst [vmem:[%s1362_s30 + $0x48] sm:$0xff] %v1385_v44 }
 0x1d5   : > { %v1389_v26 = vld [vmem:[%s2658_s26 + $0x38] sm:$0xff] }
 0x1d6   : > { %1390 = vst [vmem:[%s1362_s30 + $0x68] sm:$0xff] %v1389_v26 }
 0x1d7 PF: > { %1396 = sbr.rel (!%p2107_p5) target bundleno = 481 (0x1e1), region = 120  ;;  %s1903_s5 = sshll.u32 (%p2107_p5), %s2088_s18, 4  ;;  %v1412_v8 = vld [vmem:[%s2638_s13] sm:$0xff] (%p2107_p5)  ;;  %v1414_v38 = vld [vmem:[%s2638_s13 + $0x8] sm:$0xff] (%p2107_p5)  ;;  %v1416_v45 = vld [vmem:[%s2638_s13 + $0x10] sm:$0xff] (%p2107_p5) }
 0x1d8   : > { %s1399_s8 = scalar_lea.vmem (%p2107_p5), %s2730_s4, %s1903_s5  ;;  %v1418_v35 = vld [vmem:[%s2638_s13 + $0x18] sm:$0xff] (%p2107_p5)  ;;  %v1420_v9 = vld [vmem:[%s2638_s13 + $0x20] sm:$0xff] (%p2107_p5)  ;;  %v1422_v23 = vld [vmem:[%s2638_s13 + $0x28] sm:$0xff] (%p2107_p5) }
 0x1d9   : > { %1413 = vst [vmem:[%s1399_s8] sm:$0xff] (%p2107_p5), %v1412_v8  ;;  %v1424_v53 = vld [vmem:[%s2638_s13 + $0x30] sm:$0xff] (%p2107_p5)  ;;  %v1426_v14 = vld [vmem:[%s2638_s13 + $0x38] sm:$0xff] (%p2107_p5) }
 0x1da   : > { %1415 = vst [vmem:[%s1399_s8 + $0x8] sm:$0xff] (%p2107_p5), %v1414_v38 }
 0x1db   : > { %1417 = vst [vmem:[%s1399_s8 + $0x20] sm:$0xff] (%p2107_p5), %v1416_v45 }
 0x1dc   : > { %1419 = vst [vmem:[%s1399_s8 + $0x28] sm:$0xff] %v1418_v35 }
 0x1dd   : > { %1421 = vst [vmem:[%s1399_s8 + $0x40] sm:$0xff] %v1420_v9 }
 0x1de   : > { %1423 = vst [vmem:[%s1399_s8 + $0x48] sm:$0xff] %v1422_v23 }
 0x1df   : > { %1425 = vst [vmem:[%s1399_s8 + $0x60] sm:$0xff] %v1424_v53 }
 0x1e0   : > { %1427 = vst [vmem:[%s1399_s8 + $0x68] sm:$0xff] %v1426_v14 }
 0x1e1 PF: > { %p12_p10 = scmp.ge.s32.totalorder %s2091_s19, 4   ;;  %s2733_s15 = smov %s2041_s16 }
 0x1e2   : > { %s2734_s16 = smov %s2101_s22  ;;  %s2735_s17 = smov %s2091_s19 }
 0x1e3   :  { %14 = sbr.rel (!%p12_p10) target bundleno = 2 (0x2), region = 194 }

</bundles_post_ra>
